<compile_context>
chip_gen: v7x
topology: tpu7x:2x2x1
jax: 0.10.0
libtpu: 0.0.40
codegen_flags: <defaults>
</compile_context>

<pallas_src>
import math

import jax
import jax.numpy as jnp
from jax.experimental import pallas as pl
from jax.experimental.pallas import tpu as pltpu

_LANES = 128
_MIB = 1024 * 1024


# --------------------------------------------------------------------------- #
# Kernels
# --------------------------------------------------------------------------- #
def _softmax_kernel(x_ref, o_ref):
    """Softmax over the last dim of a (tile_rows, hidden) VMEM tile.
    NOTE: no max-subtraction on purpose -- matches the reference exp(x)/sum."""
    e = jnp.exp(x_ref[...].astype(jnp.float32))            # EUP
    denom = jnp.sum(e, axis=-1, keepdims=True)              # XLU lane reduce
    o_ref[...] = (e * pl.reciprocal(denom, approx=False)).astype(o_ref.dtype)


def _softmax_packed_kernel(x_ref, seg_ones_ref, o_ref):
    """Lane-dense small-hidden path: each physical row holds several logical
    softmax rows.  The segmented row-sum is e @ S with S a block-diagonal ones
    matrix (the MXU is idle in this mem-bound kernel).  S arrives as an input
    with a constant block index, so it is DMA'd once and never rebuilt."""
    e = jnp.exp(x_ref[...].astype(jnp.float32))
    denom = jnp.dot(e, seg_ones_ref[...], preferred_element_type=jnp.float32)
    o_ref[...] = (e * pl.reciprocal(denom, approx=False)).astype(o_ref.dtype)


def _softmax_axis_m2_kernel(x_ref, o_ref):
    """Softmax over axis=-2 of a (1, R, tile_L) tile (sublane/XLU reduce); the
    last dim stays lane-dense, so no wrapper transposes are needed."""
    e = jnp.exp(x_ref[...].astype(jnp.float32))
    denom = jnp.sum(e, axis=-2, keepdims=True)
    o_ref[...] = (e * pl.reciprocal(denom, approx=False)).astype(o_ref.dtype)


# --------------------------------------------------------------------------- #
# Hardware-aware helpers
# --------------------------------------------------------------------------- #
def _tpu_mem_params():
    try:
        cap = int(pltpu.get_tpu_info().vmem_capacity_bytes)
    except Exception:
        cap = 64 * _MIB                       # conservative fallback (v7x per-TC)
    vmem_limit = min(cap * 3 // 4, 64 * _MIB)
    return cap, vmem_limit


def _target_block_bytes(io_itemsize, vmem_cap):
    # Per-I/O-block target.  f32 intermediates are ~1x the block for f32 I/O and
    # ~2x for bf16 I/O, so bf16 targets are half.  Chips with 128 MiB VMEM
    # (v5e/v6e) get 2x bigger blocks; v7x (64 MiB/TC, 3.2 TB/s HBM) keeps ~8 MiB
    # f32 blocks, enough to keep the ~0.35 us/step overhead below ~7%.
    base = 8 * _MIB if io_itemsize >= 4 else 4 * _MIB
    if vmem_cap >= 128 * _MIB:
        base *= 2
    return base


_CORE_PARALLEL_OK = None


def _core_parallel_supported():
    """One-time probe: does CORE_PARALLEL grid semantics compile, run and give
    correct results here?  (Plain "parallel" does not actually split a grid
    axis across TensorCores; CORE_PARALLEL does on 2-TC chips like v7x.)"""
    global _CORE_PARALLEL_OK
    if _CORE_PARALLEL_OK is None:
        try:
            xp = ((jnp.arange(24 * 128, dtype=jnp.float32) % 13.0) * 0.05
                  ).reshape(24, 128)
            out = pl.pallas_call(
                _softmax_kernel,
                out_shape=jax.ShapeDtypeStruct((24, 128), jnp.float32),
                grid_spec=pltpu.PrefetchScalarGridSpec(
                    num_scalar_prefetch=0,
                    grid=(3,),
                    in_specs=[pl.BlockSpec((8, 128), lambda i: (i, 0))],
                    out_specs=pl.BlockSpec((8, 128), lambda i: (i, 0)),
                ),
                compiler_params=pltpu.CompilerParams(
                    dimension_semantics=(pltpu.CORE_PARALLEL,)),
            )(xp)
            jax.block_until_ready(out)
            e = jnp.exp(xp)
            ref = e / jnp.sum(e, axis=-1, keepdims=True)
            _CORE_PARALLEL_OK = bool(jnp.allclose(out, ref, atol=1e-5, rtol=1e-5))
        except Exception:
            _CORE_PARALLEL_OK = False
    return _CORE_PARALLEL_OK


def _grid_semantics(grid):
    """CORE_PARALLEL on the first multi-block axis (blocks are independent),
    ARBITRARY elsewhere; pure ARBITRARY fallback if CORE_PARALLEL unsupported."""
    sem = [pltpu.ARBITRARY] * len(grid)
    if _core_parallel_supported():
        for ax, n in enumerate(grid):
            if n > 1:
                sem[ax] = pltpu.CORE_PARALLEL
                break
    return tuple(sem)


def _select_tile_rows(rows, hidden, io_itemsize, row_multiple, budget_bytes,
                      target_bytes):
    # Working set per row: double-buffered input + double-buffered output (io
    # dtype) plus ~2 f32-sized intermediates (exp result / product).
    per_row_bytes = hidden * (4 * io_itemsize + 8)
    if per_row_bytes > budget_bytes:
        # TODO(synk): chunked-hidden online-normalization path for reduction
        # dims that do not fit in a VMEM tile.
        raise NotImplementedError(
            f"hidden={hidden} exceeds the per-tile VMEM budget ({budget_bytes} B)")
    max_rows_vmem = budget_bytes // per_row_bytes
    max_rows_target = max(1, target_bytes // (hidden * io_itemsize))
    tile_rows = min(rows, max_rows_vmem, max_rows_target)
    if tile_rows >= rows:
        return rows                              # single / full-extent block
    tile_rows = max(row_multiple, (tile_rows // row_multiple) * row_multiple)
    return min(tile_rows, rows)


def _segment_ones(seg_len, hidden):
    """Block-diagonal ones: S[a, b] = 1 iff a and b belong to the same logical
    softmax row of length `hidden`."""
    seg = jnp.arange(seg_len) // hidden
    return (seg[:, None] == seg[None, :]).astype(jnp.float32)


# --------------------------------------------------------------------------- #
# pallas_call wrappers
# --------------------------------------------------------------------------- #
def _call_plain(x2d, vmem_cap, vmem_limit):
    rows, hidden = x2d.shape
    io = x2d.dtype.itemsize
    row_multiple = max(8, 32 // io)              # 8 rows f32, 16 bf16
    tile_rows = _select_tile_rows(rows, hidden, io, row_multiple,
                                  budget_bytes=vmem_limit * 2 // 3,
                                  target_bytes=_target_block_bytes(io, vmem_cap))
    grid = (pl.cdiv(rows, tile_rows),)
    n = rows * hidden
    cost = pl.CostEstimate(flops=int(4 * n), transcendentals=int(n),
                           bytes_accessed=int(2 * n * io))
    return pl.pallas_call(
        _softmax_kernel,
        out_shape=jax.ShapeDtypeStruct((rows, hidden), x2d.dtype),
        grid_spec=pltpu.PrefetchScalarGridSpec(
            num_scalar_prefetch=0,
            grid=grid,
            in_specs=[pl.BlockSpec((tile_rows, hidden), lambda i: (i, 0))],
            out_specs=pl.BlockSpec((tile_rows, hidden), lambda i: (i, 0)),
        ),
        compiler_params=pltpu.CompilerParams(
            dimension_semantics=_grid_semantics(grid),
            vmem_limit_bytes=vmem_limit,
        ),
        cost_estimate=cost,
    )(x2d)


def _call_packed(xpk, seg_ones, vmem_cap, vmem_limit):
    rows, seg_len = xpk.shape
    io = xpk.dtype.itemsize
    row_multiple = max(8, 32 // io)
    tile_rows = _select_tile_rows(rows, seg_len, io, row_multiple,
                                  budget_bytes=vmem_limit * 2 // 3,
                                  target_bytes=_target_block_bytes(io, vmem_cap))
    grid = (pl.cdiv(rows, tile_rows),)
    n = rows * seg_len
    cost = pl.CostEstimate(flops=int(2 * n * seg_len + 4 * n),
                           transcendentals=int(n),
                           bytes_accessed=int(2 * n * io + seg_len * seg_len * 4))
    return pl.pallas_call(
        _softmax_packed_kernel,
        out_shape=jax.ShapeDtypeStruct((rows, seg_len), xpk.dtype),
        grid_spec=pltpu.PrefetchScalarGridSpec(
            num_scalar_prefetch=0,
            grid=grid,
            in_specs=[pl.BlockSpec((tile_rows, seg_len), lambda i: (i, 0)),
                      # Constant block index -> DMA'd once, reused every step.
                      pl.BlockSpec((seg_len, seg_len), lambda i: (0, 0))],
            out_specs=pl.BlockSpec((tile_rows, seg_len), lambda i: (i, 0)),
        ),
        compiler_params=pltpu.CompilerParams(
            dimension_semantics=_grid_semantics(grid),
            vmem_limit_bytes=vmem_limit,
        ),
        cost_estimate=cost,
    )(xpk, seg_ones)


def _softmax_lastdim_2d(x2d):
    rows, hidden = x2d.shape
    vmem_cap, vmem_limit = _tpu_mem_params()

    if hidden < _LANES:
        # Prefer lane-dense packing: fold `g` logical rows into one physical
        # 128-lane row so stores are full-width vst (no masked vst.msk).
        # seg_len is capped at 256 so the f32 ones-matmul stays negligible on
        # v5e's MXU (in practice only hidden | 128, i.e. seg_len == 128, packs).
        g = _LANES // math.gcd(_LANES, hidden)
        seg_len = g * hidden
        if seg_len <= 256:
            pad_rows = (-rows) % g
            xp = x2d if pad_rows == 0 else jnp.pad(x2d, ((0, pad_rows), (0, 0)))
            xpk = xp.reshape((rows + pad_rows) // g, seg_len)
            outpk = _call_packed(xpk, _segment_ones(seg_len, hidden),
                                 vmem_cap, vmem_limit)
            return outpk.reshape(rows + pad_rows, hidden)[:rows]
        # Otherwise pad the reduction dim up to a full 128-lane row with -inf
        # (exp(-inf) == 0 leaves the row sums untouched) and slice it back off.
        xp = jnp.pad(x2d, ((0, 0), (0, _LANES - hidden)),
                     constant_values=-jnp.inf)
        return _call_plain(xp, vmem_cap, vmem_limit)[:, :hidden]

    return _call_plain(x2d, vmem_cap, vmem_limit)


def _softmax_axis_minus2(x3d):
    """Softmax over axis=-2 of a (B, R, L) array: reduce along sublanes inside
    the kernel so the last dim stays lane-dense (no wrapper transposes)."""
    b, r, l = x3d.shape
    io = x3d.dtype.itemsize
    vmem_cap, vmem_limit = _tpu_mem_params()
    budget = vmem_limit * 2 // 3
    per_col_bytes = r * (4 * io + 8)
    if per_col_bytes * min(l, _LANES) > budget:
        # TODO(synk): chunked-R online-normalization path for huge reduction dims.
        raise NotImplementedError(
            f"softmax reduction dim R={r} too large for the VMEM budget")
    max_cols_vmem = budget // per_col_bytes
    max_cols_target = max(1, _target_block_bytes(io, vmem_cap) // (r * io))
    tile_l = min(l, max_cols_vmem, max_cols_target)
    if tile_l < l:
        tile_l = min(l, max(_LANES, (tile_l // _LANES) * _LANES))
    grid = (b, pl.cdiv(l, tile_l))
    n = b * r * l
    cost = pl.CostEstimate(flops=int(4 * n), transcendentals=int(n),
                           bytes_accessed=int(2 * n * io))
    return pl.pallas_call(
        _softmax_axis_m2_kernel,
        out_shape=jax.ShapeDtypeStruct((b, r, l), x3d.dtype),
        grid_spec=pltpu.PrefetchScalarGridSpec(
            num_scalar_prefetch=0,
            grid=grid,
            in_specs=[pl.BlockSpec((1, r, tile_l), lambda bi, j: (bi, 0, j))],
            out_specs=pl.BlockSpec((1, r, tile_l), lambda bi, j: (bi, 0, j)),
        ),
        compiler_params=pltpu.CompilerParams(
            dimension_semantics=_grid_semantics(grid),
            vmem_limit_bytes=vmem_limit,
        ),
        cost_estimate=cost,
    )(x3d)


# --------------------------------------------------------------------------- #
# Public wrapper
# --------------------------------------------------------------------------- #
def pallas_softmax(x: jax.Array, dim: int = None) -> jax.Array:
    """exp(x) / sum(exp(x), dim) with a Pallas TPU kernel.

    NOTE (matches the quirky PyTorch reference exactly):
      * `if not dim: dim = -1` also remaps dim=0 to the LAST axis.
      * There is NO max-subtraction, so |x| >~ 88 overflows exp in f32 --
        exactly like `torch.e ** x` in the reference.
    """
    if not dim:
        dim = -1
    ndim = x.ndim
    axis = dim if dim >= 0 else dim + ndim

    # Second-to-last axis: handled in-kernel with a sublane reduce.
    if ndim >= 2 and axis == ndim - 2:
        lead = x.shape[:-2]
        b = math.prod(lead) if lead else 1
        out = _softmax_axis_minus2(x.reshape(b, x.shape[-2], x.shape[-1]))
        return out.reshape(x.shape)

    # Last axis (possibly after a transpose for other axes).
    # TODO(synk): in-kernel strided path for axes other than -1 / -2 (currently
    # falls back to two XLA transposes around the last-dim kernel).
    xm = x if axis == ndim - 1 else jnp.moveaxis(x, axis, -1)
    shape = xm.shape
    hidden = shape[-1]
    rows = math.prod(shape[:-1]) if len(shape) > 1 else 1
    out = _softmax_lastdim_2d(xm.reshape(rows, hidden)).reshape(shape)
    return out if axis == ndim - 1 else jnp.moveaxis(out, -1, axis)


# --------------------------------------------------------------------------- #
# Self-test
# --------------------------------------------------------------------------- #
if __name__ == "__main__":
    key = jax.random.PRNGKey(0)
    k1, k2, k3, k4, k5 = jax.random.split(key, 5)

    def _ref(a, axis=-1):
        af = a.astype(jnp.float32)
        e = jnp.exp(af)
        return e / jnp.sum(e, axis=axis, keepdims=True)

    # 1) (seq=8, hidden=32) f32 -- lane-dense packed path (4 logical rows/row).
    x1 = jax.random.normal(k1, (8, 32), dtype=jnp.float32)
    o1 = pallas_softmax(x1)
    jax.block_until_ready(o1)
    assert o1.shape == x1.shape and o1.dtype == x1.dtype
    assert jnp.allclose(o1, _ref(x1), atol=3e-3, rtol=3e-3)
    assert jnp.allclose(jnp.sum(o1, axis=-1), 1.0, atol=3e-3)

    # 2) (seq=16, hidden=256) f32 -- plain lane-dense path.
    x2 = jax.random.normal(k2, (16, 256), dtype=jnp.float32)
    o2 = pallas_softmax(x2)
    jax.block_until_ready(o2)
    assert jnp.allclose(o2, _ref(x2), atol=3e-3, rtol=3e-3)

    # 3) (batch=2, channels=4, hidden=16) bf16, default dim -- packed, bf16 I/O.
    x3 = jax.random.normal(k3, (2, 4, 16), dtype=jnp.bfloat16)
    o3 = pallas_softmax(x3)
    jax.block_until_ready(o3)
    assert o3.shape == x3.shape and o3.dtype == jnp.bfloat16
    assert jnp.allclose(o3.astype(jnp.float32), _ref(x3), atol=2e-2, rtol=2e-2)

    # 4) (2, 4, 16) f32, dim=1 (second-to-last axis) -- in-kernel axis=-2 path,
    #    no wrapper transposes.
    x4 = jax.random.normal(k4, (2, 4, 16), dtype=jnp.float32)
    o4 = pallas_softmax(x4, dim=1)
    jax.block_until_ready(o4)
    assert o4.shape == x4.shape
    assert jnp.allclose(o4, _ref(x4, axis=1), atol=3e-3, rtol=3e-3)

    # 5) (8, 48) f32 -- small hidden that cannot pack; padded-to-128-lane path.
    x5 = jax.random.normal(k5, (8, 48), dtype=jnp.float32)
    o5 = pallas_softmax(x5)
    jax.block_until_ready(o5)
    assert o5.shape == x5.shape
    assert jnp.allclose(o5, _ref(x5), atol=3e-3, rtol=3e-3)

    print("KERNEL_OK")
</pallas_src>

<mosaic_0001>
module attributes {stable_mosaic.version = 11 : i64} {
  func.func @_softmax_kernel(%arg0: i32, %arg1: memref<8x128xf32, #tpu.memory_space<vmem>>, %arg2: memref<8x128xf32, #tpu.memory_space<vmem>>) attributes {dimension_semantics = [#tpu.dimension_semantics<core_parallel>], iteration_bounds = array<i64: 3>, scalar_prefetch = 0 : i64, scratch_operands = 0 : i64, tpu.core_type = #tpu.core_type<tc>, window_params = [{transform_indices = @transform_0, window_bounds = array<i64: 8, 128>}, {transform_indices = @transform_1, window_bounds = array<i64: 8, 128>}]} {
    %c0 = arith.constant 0 : index
    %c0_0 = arith.constant 0 : index
    %0 = vector.load %arg1[%c0, %c0_0] : memref<8x128xf32, #tpu.memory_space<vmem>>, vector<8x128xf32>
    %1 = math.exp %0 : vector<8x128xf32>
    %cst = arith.constant dense<0.000000e+00> : vector<8xf32>
    %2 = vector.multi_reduction <add>, %1, %cst [1] : vector<8x128xf32> to vector<8xf32>
    %3 = vector.shape_cast %2 : vector<8xf32> to vector<8x1xf32>
    %4 = tpu.reciprocal %3 : vector<8x1xf32> -> vector<8x1xf32>
    %5 = vector.broadcast %4 : vector<8x1xf32> to vector<8x128xf32>
    %6 = arith.mulf %1, %5 : vector<8x128xf32>
    %c0_1 = arith.constant 0 : index
    %c0_2 = arith.constant 0 : index
    %7 = vector.load %arg2[%c0_1, %c0_2] : memref<8x128xf32, #tpu.memory_space<vmem>>, vector<8x128xf32>
    tpu.vector_store %arg2[%c0_1, %c0_2], %6 {strides = array<i32>} : memref<8x128xf32, #tpu.memory_space<vmem>>, vector<8x128xf32>,
    return
  }
  func.func @transform_0(%arg0: i32) -> (i32, i32) {
    %c0_i32 = arith.constant 0 : i32
    %c0_i32_0 = arith.constant 0 : i32
    return %arg0, %c0_i32 : i32, i32
  }
  func.func @transform_1(%arg0: i32) -> (i32, i32) {
    %c0_i32 = arith.constant 0 : i32
    %c0_i32_0 = arith.constant 0 : i32
    return %arg0, %c0_i32 : i32, i32
  }
}

module attributes {stable_mosaic.version = 11 : i64} {
  func.func @_softmax_packed_kernel(%arg0: i32, %arg1: memref<2x128xf32, #tpu.memory_space<vmem>>, %arg2: memref<128x128xf32, #tpu.memory_space<vmem>>, %arg3: memref<2x128xf32, #tpu.memory_space<vmem>>) attributes {dimension_semantics = [#tpu.dimension_semantics<arbitrary>], iteration_bounds = array<i64: 1>, scalar_prefetch = 0 : i64, scratch_operands = 0 : i64, tpu.core_type = #tpu.core_type<tc>, window_params = [{transform_indices = @transform_0, window_bounds = array<i64: 2, 128>}, {pipeline_mode = #tpu.pipeline_mode<synchronous>, transform_indices = @transform_1, window_bounds = array<i64: 128, 128>}, {transform_indices = @transform_2, window_bounds = array<i64: 2, 128>}]} {
    %c0 = arith.constant 0 : index
    %c0_0 = arith.constant 0 : index
    %0 = vector.load %arg1[%c0, %c0_0] : memref<2x128xf32, #tpu.memory_space<vmem>>, vector<2x128xf32>
    %1 = math.exp %0 : vector<2x128xf32>
    %c0_1 = arith.constant 0 : index
    %c0_2 = arith.constant 0 : index
    %2 = vector.load %arg2[%c0_1, %c0_2] : memref<128x128xf32, #tpu.memory_space<vmem>>, vector<128x128xf32>
    %cst = arith.constant dense<0.000000e+00> : vector<2x128xf32>
    %3 = tpu.matmul %1, %2, %cst {dimension_numbers = #tpu.dot_dimension_numbers<[1], [0], [0], [1], [0, 0, 1, 1], [], []>} : vector<2x128xf32>, vector<128x128xf32>, vector<2x128xf32> -> vector<2x128xf32>
    %4 = tpu.reciprocal %3 : vector<2x128xf32> -> vector<2x128xf32>
    %5 = arith.mulf %1, %4 : vector<2x128xf32>
    %c0_3 = arith.constant 0 : index
    %c0_4 = arith.constant 0 : index
    %6 = vector.load %arg3[%c0_3, %c0_4] : memref<2x128xf32, #tpu.memory_space<vmem>>, vector<2x128xf32>
    tpu.vector_store %arg3[%c0_3, %c0_4], %5 {strides = array<i32>} : memref<2x128xf32, #tpu.memory_space<vmem>>, vector<2x128xf32>,
    return
  }
  func.func @transform_0(%arg0: i32) -> (i32, i32) {
    %c0_i32 = arith.constant 0 : i32
    %c0_i32_0 = arith.constant 0 : i32
    return %arg0, %c0_i32 : i32, i32
  }
  func.func @transform_1(%arg0: i32) -> (i32, i32) {
    %c0_i32 = arith.constant 0 : i32
    %c0_i32_0 = arith.constant 0 : i32
    %c0_i32_1 = arith.constant 0 : i32
    return %c0_i32, %c0_i32_0 : i32, i32
  }
  func.func @transform_2(%arg0: i32) -> (i32, i32) {
    %c0_i32 = arith.constant 0 : i32
    %c0_i32_0 = arith.constant 0 : i32
    return %arg0, %c0_i32 : i32, i32
  }
}

</mosaic_0001>

<bundles_post_ra>
// kernel: tpu_custom_call.1
= control target key start
LH: loop header
LB: loop body
LE: loop exit
PB: predicated region body
PF: predicated region fallthrough
CT: control target
= control target key end

     0   :  { %7 = vsyncpa [#allocation3], 0  ;;  %s372_s0 = inlined_call_operand.hbm [shape: f32[2,128], index: 0, kind: input, shape index: {}]   ;;  %s373_s1 = inlined_call_operand.hbm [shape: f32[128,128], index: 1, kind: input, shape index: {}]   ;;  %s374_s2 = inlined_call_operand.hbm [shape: f32[2,128], index: 2, kind: output, shape index: {}]  }
   0x1   :  { %8 = vsyncpa [#allocation6], 0 }
   0x2   :  { %9 = vsyncpa [#allocation4], 0  ;;  %s306_s9 = smov [#allocation2]   ;;  %s307_s11 = smov [#allocation5]  }
   0x3   :  { %s16_s10 = sshll.u32 %s306_s9, 4  ;;  %s25_s12 = sshll.u32 %s307_s11, 4  ;;  %s17_s10 = int_to_ptr.vmem [resolvable:$true] %s16_s10  ;;  %s329_s12 = int_to_ptr.vmem [resolvable:$true] %s25_s12 }
   0x4   :  { %s234_s15 = scalar_lea.hbm %s372_s0, 32 }
   0x5   :  { %p235_p0 = scmp.ne.s32.totalorder %s372_s0, %s234_s15  ;;  %p238_p1 = scmp.lt.u32.totalorder %s234_s15, %s372_s0 }
   0x7   :  { %p240_p2 = pnand %p238_p1, %p235_p0 }
   0x9   :  { %243 = shalt.err (!%p240_p2)
}
   0xa   :  { %s244_s20 = scalar_lea.vmem %s17_s10, 32  ;;  %p249_p4 = scmp.lt.s32.totalorder %s17_s10, %s17_s10 }
   0xb   :  { %p245_p3 = scmp.ne.s32.totalorder %s17_s10, %s244_s20  ;;  %p250_p5 = scmp.lt.s32.totalorder %s244_s20, %s244_s20 }
   0xd   :  { %p251_p6 = por %p250_p5, %p249_p4 }
   0xf   :  { %p252_p7 = pnand %p251_p6, %p245_p3 }
  0x11   :  { %255 = shalt.err (!%p252_p7)
}
  0x12   :  { %19 = dma.hbm_to_vmem [thread:$0]  %s372_s0, 32, %s17_s10, [#allocation3]  }
  0x13   :  { %s256_s25 = scalar_lea.hbm %s373_s1, 2048 }
  0x14   :  { %p257_p8 = scmp.ne.s32.totalorder %s373_s1, %s256_s25  ;;  %p260_p9 = scmp.lt.u32.totalorder %s256_s25, %s373_s1 }
  0x16   :  { %p262_p10 = pnand %p260_p9, %p257_p8 }
  0x18   :  { %265 = shalt.err (!%p262_p10)
}
  0x19   :  { %s266_s30 = scalar_lea.vmem %s329_s12, 2048  ;;  %p271_p12 = scmp.lt.s32.totalorder %s329_s12, %s329_s12 }
  0x1a   :  { %p267_p11 = scmp.ne.s32.totalorder %s329_s12, %s266_s30  ;;  %p272_p13 = scmp.lt.s32.totalorder %s266_s30, %s266_s30 }
  0x1c   :  { %p273_p0 = por %p272_p13, %p271_p12 }
  0x1e   :  { %p274_p1 = pnand %p273_p0, %p267_p11 }
  0x20   :  { %277 = shalt.err (!%p274_p1)
}
  0x21   :  { %s308_s0 = smov 128   ;;  %s309_s3 = smov 8  }
  0x22   :  { %31 = dma.hbm_to_vmem [thread:$0]  %s373_s1, 2048, %s329_s12, [#allocation6], %s308_s0, %s308_s0, %s309_s3  }
  0x23   :  { %300 = dma.done.wait [#allocation3], 32  }
  0x24   :  { %301 = vsyncadd [#allocation3], 4294967264 }
  0x25   :  { %302 = dma.done.wait [#allocation6], 2048  }
  0x26   :  { %303 = vsyncadd [#allocation6], 4294965248  ;;  %v310_v0 = vmov 0.0|0.0   ;;  %vm311_vm0 = vmmov 0   ;;  %v312_v1 = vmov 0.0   ;;  %v41_v2 = vld [vmem:[#allocation5] sm:$0xff] }
  0x27   :  { %198 = vmatprep.subr.bf16.mxu0 %v310_v0  ;;  %195 = vmatprep.mubr.msk.f32.mxu0 %vm311_vm0, %v312_v1  ;;  %v42_v3 = vld [vmem:[#allocation5 + $0x8] sm:$0xff]  ;;  %v43_v4 = vld [vmem:[#allocation5 + $0x10] sm:$0xff]  ;;  %v44_v6 = vld [vmem:[#allocation5 + $0x18] sm:$0xff]  ;;  %s313_s1 = smov [#allocation7]  }
  0x28   :  { %v199_v5 = vpack.c.bf16 %v42_v3, %v41_v2  ;;  %v202_v7 = vpack.c.bf16 %v44_v6, %v43_v4  ;;  %v45_v8 = vld [vmem:[#allocation5 + $0x20] sm:$0xff]  ;;  %v46_v9 = vld [vmem:[#allocation5 + $0x28] sm:$0xff]  ;;  %v47_v11 = vld [vmem:[#allocation5 + $0x30] sm:$0xff]  ;;  %s136_s6 = sshll.u32 %s313_s1, 4  ;;  %s137_s6 = int_to_ptr.vmem [resolvable:$true] %s136_s6 }
  0x29   :  { %v205_v10 = vpack.c.bf16 %v46_v9, %v45_v8  ;;  %v48_v12 = vld [vmem:[#allocation5 + $0x38] sm:$0xff]  ;;  %v49_v14 = vld [vmem:[#allocation5 + $0x40] sm:$0xff]  ;;  %v50_v15 = vld [vmem:[#allocation5 + $0x48] sm:$0xff]  ;;  %s278_s7 = scalar_lea.vmem %s137_s6, 32  ;;  %p283_p3 = scmp.lt.s32.totalorder %s137_s6, %s137_s6 }
  0x2a   :  { %200 = vmatpush3.bf16.msra.mxu0 %v199_v5  ;;  %v208_v13 = vpack.c.bf16 %v48_v12, %v47_v11  ;;  %v38_v16 = vld [vmem:[#allocation2] sm:$0x3]  ;;  %v211_v17 = vpack.c.bf16 %v50_v15, %v49_v14  ;;  %v51_v18 = vld [vmem:[#allocation5 + $0x50] sm:$0xff]  ;;  %v53_v22 = vld [vmem:[#allocation5 + $0x60] sm:$0xff]  ;;  %p279_p2 = scmp.ne.s32.totalorder %s137_s6, %s278_s7  ;;  %p284_p4 = scmp.lt.s32.totalorder %s278_s7, %s278_s7 }
  0x2b   :  { %201 = vmatprep.subr.bf16.mxu0 %v310_v0  ;;  %v52_v19 = vld [vmem:[#allocation5 + $0x58] sm:$0xff]  ;;  %v39_v20 = vmul.f32 1.442695, %v38_v16  ;;  %v54_v23 = vld [vmem:[#allocation5 + $0x68] sm:$0xff]  ;;  %v55_v25 = vld [vmem:[#allocation5 + $0x70] sm:$0xff] }
  0x2c   :  { %v214_v21 = vpack.c.bf16 %v52_v19, %v51_v18  ;;  %v217_v24 = vpack.c.bf16 %v54_v23, %v53_v22  ;;  %v56_v26 = vld [vmem:[#allocation5 + $0x78] sm:$0xff]  ;;  %p285_p5 = por %p284_p4, %p283_p3 }
  0x2d   :  { %230 = vpow2.f32 %v39_v20  ;;  %v220_v27 = vpack.c.bf16 %v56_v26, %v55_v25 }
  0x2e   :  { %203 = vmatpush3.bf16.msra.mxu0 %v202_v7  ;;  %p286_p6 = pnand %p285_p5, %p279_p2 }
  0x2f   :  { %204 = vmatprep.subr.bf16.mxu0 %v310_v0 }
  0x32   :  { %206 = vmatpush3.bf16.msra.mxu0 %v205_v10 }
  0x33   :  { %207 = vmatprep.subr.bf16.mxu0 %v310_v0 }
  0x36   :  { %209 = vmatpush3.bf16.msra.mxu0 %v208_v13 }
  0x37   :  { %210 = vmatprep.subr.bf16.mxu0 %v310_v0  ;;  %v231_v28 = vpop.eup %230 }
  0x3a   :  { %212 = vmatpush3.bf16.msra.mxu0 %v211_v17 }
  0x3b   :  { %213 = vmatprep.subr.bf16.mxu0 %v310_v0 }
  0x3e   :  { %215 = vmatpush3.bf16.msra.mxu0 %v214_v21 }
  0x3f   :  { %216 = vmatprep.subr.bf16.mxu0 %v310_v0 }
  0x42   :  { %218 = vmatpush3.bf16.msra.mxu0 %v217_v24 }
  0x43   :  { %219 = vmatprep.subr.bf16.mxu0 %v310_v0 }
  0x46   :  { %221 = vmatpush3.bf16.msra.mxu0 %v220_v27 }
  0x49   :  { %196 = vmatmul.mubr.f32.vlgmr.msra.gmra.mrb[0].mxu0 %v231_v28 }
 0x11c   :  { %v123_v29 = vpop.f32.mrb[0].mxu0 }
 0x11d   :  { %232 = vrcp.f32 %v123_v29  ;;  %v197_v30 = vpop.f32.mrb[1].mxu0 }
 0x127   :  { %v233_v31 = vpop.eup %232 }
 0x128   :  { %v128_v32 = vmul.f32 %v233_v31, %v231_v28 }
 0x12a   :  { %129 = vst [vmem:[#allocation7] sm:$0x3] %v128_v32 }
 0x12b   :  { %289 = shalt.err (!%p286_p6)
}
 0x12c   :  { %s290_s10 = scalar_lea.hbm %s374_s2, 32 }
 0x12d   :  { %p291_p7 = scmp.ne.s32.totalorder %s374_s2, %s290_s10  ;;  %p294_p8 = scmp.lt.u32.totalorder %s290_s10, %s374_s2 }
 0x12f   :  { %p296_p9 = pnand %p294_p8, %p291_p7 }
 0x131   :  { %299 = shalt.err (!%p296_p9)
}
 0x132   :  { %139 = dma.vmem_to_hbm [thread:$0]  %s137_s6, 32, %s374_s2, [#allocation4]  }
 0x133   :  { %304 = dma.done.wait [#allocation4], 32  }
 0x134   :  { %305 = vsyncadd [#allocation4], 4294967264 }
 0x135   :  { %143 = vsyncpa [#allocation3], 1 }
 0x136   :  { %144 = vsyncpa [#allocation6], 1 }
 0x137   :  { %145 = vsyncpa [#allocation4], 1 }

</bundles_post_ra>
